<compile_context>
chip_gen: v7x
topology: tpu7x:2x2x1
jax: 0.10.0
libtpu: 0.0.40
codegen_flags: <defaults>
</compile_context>

<pallas_src>
import jax
import jax.numpy as jnp
from jax import lax
from jax.experimental import pallas as pl
from jax.experimental.pallas import tpu as pltpu


# ----------------------------------------------------------------------------
# Connection tables (copied verbatim from the PyTorch module, as Python data).
# ----------------------------------------------------------------------------
_LENET1_IDXS = [(0, 0), (0, 1), (0, 2), (0, 4), (0, 5), (1, 1), (1, 2), (1, 3),
                (1, 4), (1, 5), (2, 6), (2, 7), (2, 8), (2, 10), (2, 11),
                (3, 7), (3, 8), (3, 9), (3, 10), (3, 11)]
_LENET5_IDXS = [(0, 0), (1, 0), (2, 0), (1, 1), (2, 1), (3, 1), (2, 2), (3, 2),
                (4, 2), (3, 3), (4, 3), (5, 3), (0, 4), (4, 4), (5, 4), (0, 5),
                (1, 5), (5, 5), (0, 6), (1, 6), (2, 6), (3, 6), (1, 7), (2, 7),
                (3, 7), (4, 7), (2, 8), (3, 8), (4, 8), (5, 8), (0, 9), (3, 9),
                (4, 9), (5, 9), (0, 10), (1, 10), (4, 10), (5, 10), (0, 11),
                (1, 11), (2, 11), (5, 11), (0, 12), (1, 12), (3, 12), (4, 12),
                (1, 13), (2, 13), (4, 13), (5, 13), (0, 14), (2, 14), (3, 14),
                (5, 14), (0, 15), (1, 15), (2, 15), (3, 15), (4, 15), (5, 15)]


def lenet_c3_connections(lenet_name: str) -> jnp.ndarray:
    """(C_in, C_out) binary connection matrix, same as the PyTorch module."""
    if lenet_name.lower() == "lenet-1":
        shape, idxs = (4, 12), _LENET1_IDXS
    elif lenet_name.lower() == "lenet-5":
        shape, idxs = (6, 16), _LENET5_IDXS
    else:
        raise ValueError(f"unknown lenet_name: {lenet_name}")
    rows = jnp.array([i for i, _ in idxs], dtype=jnp.int32)
    cols = jnp.array([j for _, j in idxs], dtype=jnp.int32)
    return jnp.zeros(shape, jnp.float32).at[rows, cols].set(1.0)


def init_c3_params(key, lenet_name: str = "lenet-5", kernel_size: int = 5,
                   bias: bool = True):
    """Masked dense weights equivalent to the per-group Conv2d's of the module.

    Disconnected (in_ch, out_ch) pairs get exactly-zero weights, so a dense
    conv with this weight reproduces the locally connected layer.
    """
    conn = lenet_c3_connections(lenet_name)          # (C_in, C_out)
    c_in, c_out = conn.shape
    kw, kb = jax.random.split(key)
    # Per-output-channel fan-in mirrors torch's per-group Conv2d init scale.
    fan_in = conn.sum(axis=0) * kernel_size * kernel_size       # (C_out,)
    bound = 1.0 / jnp.sqrt(fan_in)                               # (C_out,)
    w = jax.random.uniform(kw, (c_out, c_in, kernel_size, kernel_size),
                           jnp.float32, -1.0, 1.0) * bound[:, None, None, None]
    w = w * conn.T[:, :, None, None]                 # mask disconnected channels
    b = (jax.random.uniform(kb, (c_out,), jnp.float32, -1.0, 1.0) * bound
         if bias else jnp.zeros((c_out,), jnp.float32))
    return w, b


# ----------------------------------------------------------------------------
# Pallas kernel: one MXU matmul per M-tile (bias already folded into K).
# ----------------------------------------------------------------------------
def _c3_matmul_kernel(p_ref, w_ref, o_ref):
    # p_ref: (tile_m, K+1) im2col patches (+ ones column carrying the bias)
    # w_ref: (K+1, N_pad) flattened masked weights (+ bias row)
    # o_ref: (tile_m, N_pad) lane-dense output tile
    o_ref[...] = jnp.dot(
        p_ref[...], w_ref[...], preferred_element_type=jnp.float32
    ).astype(o_ref.dtype)


def _round_up(x: int, m: int) -> int:
    return ((x + m - 1) // m) * m


def lenet_c3_forward(x: jax.Array, weight: jax.Array, bias: jax.Array,
                     *, kernel_size: int = 5, tile_m: int | None = None,
                     compute_dtype=jnp.float32,
                     output_layout: str = "NCHW") -> jax.Array:
    """x: (B, C_in, H, W) f32 -> (B, C_out, H-4, W-4) (NCHW, like PyTorch).

    `compute_dtype=jnp.bfloat16` halves MXU/DMA cost at large batch (f32 accum
    is kept via preferred_element_type).  `output_layout="NHWC"` skips the
    final transpose for consumers that can take channels-last directly.
    """
    b_, c_in, h, w_ = x.shape
    c_out = weight.shape[0]
    k = kernel_size
    oh, ow = h - k + 1, w_ - k + 1
    m = b_ * oh * ow
    kdim = c_in * k * k

    # ---- im2col in ONE op, emitted channel-last so a plain reshape suffices.
    # Patch-channel ordering is (c, ky, kx) -> matches weight.reshape(C_out, C_in*K*K).
    patches = lax.conv_general_dilated_patches(
        x, filter_shape=(k, k), window_strides=(1, 1), padding="VALID",
        dimension_numbers=("NCHW", "OIHW", "NHWC"),
    ).reshape(m, kdim)                                           # (M, K)

    # ---- tile_m: >=2 grid steps for small problems (v7x megacore), big tiles
    #      for large M to amortize ~0.35us per-step overhead. Must be mult of 8.
    if tile_m is None:
        if m <= 512:
            tile_m = 128
        elif m <= 4096:
            tile_m = 512
        else:
            tile_m = 1024
    assert tile_m > 0 and tile_m % 8 == 0, "tile_m must be a positive multiple of 8"

    m_pad = _round_up(m, tile_m)
    n_pad = _round_up(c_out, 128)          # lane-dense output last dim
    k_aug = kdim + 1                       # +1 ones column carries the bias

    # LHS: append ones column (bias rides through the MXU) and pad only M.
    p_aug = jnp.pad(
        patches.astype(compute_dtype),
        ((0, m_pad - m), (0, 1)),
        constant_values=((0.0, 0.0), (0.0, 1.0)),
    )                                                            # (M_pad, K+1)

    # RHS: flattened masked weights + bias row, padded to 128 output lanes.
    w_flat = weight.reshape(c_out, kdim).T                       # (K, C_out)
    w_aug = jnp.concatenate([w_flat, bias[None, :]], axis=0)     # (K+1, C_out)
    w_aug = jnp.pad(w_aug, ((0, 0), (0, n_pad - c_out))).astype(compute_dtype)

    out = pl.pallas_call(
        _c3_matmul_kernel,
        out_shape=jax.ShapeDtypeStruct((m_pad, n_pad), jnp.float32),
        grid=(m_pad // tile_m,),
        in_specs=[
            # Last block dim == full array dim -> no 128-padding of K in HBM/DMA.
            pl.BlockSpec((tile_m, k_aug), lambda i: (i, 0)),
            pl.BlockSpec((k_aug, n_pad), lambda i: (0, 0)),
        ],
        out_specs=pl.BlockSpec((tile_m, n_pad), lambda i: (i, 0)),
        compiler_params=pltpu.CompilerParams(
            dimension_semantics=("parallel",),   # M axis is embarrassingly parallel
        ),
    )(p_aug, w_aug)

    # Strip padding; restore requested layout (NCHW matches the PyTorch module).
    out = out[:m, :c_out].reshape(b_, oh, ow, c_out)
    if output_layout.upper() == "NCHW":
        out = out.transpose(0, 3, 1, 2)
    return out


if __name__ == "__main__":
    key = jax.random.PRNGKey(0)
    k_x, k_p = jax.random.split(key)

    # LeNet-5 C3: input is the S2 feature map (B, 6, 14, 14) -> (B, 16, 10, 10).
    B, C_IN, H, W = 2, 6, 14, 14
    x = jax.random.normal(k_x, (B, C_IN, H, W), dtype=jnp.float32)
    weight, bias = init_c3_params(k_p, "lenet-5", bias=True)

    out = lenet_c3_forward(x, weight, bias)
    out = jax.block_until_ready(out)

    # Pure-JAX reference: the locally connected C3 layer equals a dense conv
    # whose weights are zero on disconnected (in, out) channel pairs.
    ref = lax.conv_general_dilated(
        x, weight, window_strides=(1, 1), padding="VALID",
        dimension_numbers=("NCHW", "OIHW", "NCHW"),
        precision=lax.Precision.HIGHEST,
    ) + bias[None, :, None, None]

    assert out.shape == (B, 16, H - 4, W - 4), out.shape
    assert out.dtype == jnp.float32
    max_err = float(jnp.max(jnp.abs(out - ref)))
    assert jnp.allclose(out, ref, rtol=1e-3, atol=1e-3), f"max abs err {max_err}"

    print("KERNEL_OK")
</pallas_src>

<mosaic_0001>
module attributes {stable_mosaic.version = 11 : i64} {
  func.func @_c3_matmul_kernel(%arg0: i32, %arg1: memref<128x151xf32, #tpu.memory_space<vmem>>, %arg2: memref<151x128xf32, #tpu.memory_space<vmem>>, %arg3: memref<128x128xf32, #tpu.memory_space<vmem>>) attributes {dimension_semantics = [#tpu.dimension_semantics<parallel>], iteration_bounds = array<i64: 2>, scalar_prefetch = 0 : i64, scratch_operands = 0 : i64, tpu.core_type = #tpu.core_type<tc>, window_params = [{transform_indices = @transform_0, window_bounds = array<i64: 128, 151>}, {pipeline_mode = #tpu.pipeline_mode<synchronous>, transform_indices = @transform_1, window_bounds = array<i64: 151, 128>}, {transform_indices = @transform_2, window_bounds = array<i64: 128, 128>}]} {
    %c0 = arith.constant 0 : index
    %c0_0 = arith.constant 0 : index
    %0 = vector.load %arg1[%c0, %c0_0] : memref<128x151xf32, #tpu.memory_space<vmem>>, vector<128x151xf32>
    %c0_1 = arith.constant 0 : index
    %c0_2 = arith.constant 0 : index
    %1 = vector.load %arg2[%c0_1, %c0_2] : memref<151x128xf32, #tpu.memory_space<vmem>>, vector<151x128xf32>
    %cst = arith.constant dense<0.000000e+00> : vector<128x128xf32>
    %2 = tpu.matmul %0, %1, %cst {dimension_numbers = #tpu.dot_dimension_numbers<[1], [0], [0], [1], [0, 0, 1, 1], [], []>} : vector<128x151xf32>, vector<151x128xf32>, vector<128x128xf32> -> vector<128x128xf32>
    %c0_3 = arith.constant 0 : index
    %c0_4 = arith.constant 0 : index
    %3 = vector.load %arg3[%c0_3, %c0_4] : memref<128x128xf32, #tpu.memory_space<vmem>>, vector<128x128xf32>
    tpu.vector_store %arg3[%c0_3, %c0_4], %2 {strides = array<i32>} : memref<128x128xf32, #tpu.memory_space<vmem>>, vector<128x128xf32>,
    return
  }
  func.func @transform_0(%arg0: i32) -> (i32, i32) {
    %c0_i32 = arith.constant 0 : i32
    %c0_i32_0 = arith.constant 0 : i32
    return %arg0, %c0_i32 : i32, i32
  }
  func.func @transform_1(%arg0: i32) -> (i32, i32) {
    %c0_i32 = arith.constant 0 : i32
    %c0_i32_0 = arith.constant 0 : i32
    %c0_i32_1 = arith.constant 0 : i32
    return %c0_i32, %c0_i32_0 : i32, i32
  }
  func.func @transform_2(%arg0: i32) -> (i32, i32) {
    %c0_i32 = arith.constant 0 : i32
    %c0_i32_0 = arith.constant 0 : i32
    return %arg0, %c0_i32 : i32, i32
  }
}

</mosaic_0001>

<bundles_post_ra>
// kernel: tpu_custom_call.1
= control target key start
LH: loop header
LB: loop body
LE: loop exit
PB: predicated region body
PF: predicated region fallthrough
CT: control target
= control target key end

     0   :  { %7 = vsyncpa [#allocation3], 0  ;;  %s945_s0 = inlined_call_operand.vmem [shape: f32[256,151], index: 0, kind: input, shape index: {}]   ;;  %s946_s1 = inlined_call_operand.vmem [shape: f32[151,128], index: 1, kind: input, shape index: {}]   ;;  %s947_s2 = inlined_call_operand.hbm [shape: f32[256,128], index: 2, kind: output, shape index: {}]  }
   0x1   :  { %9 = vsyncpa [#allocation3 + $0x1], 0  ;;  %s695_s9 = smov 0   ;;  %s697_s10 = smov 0  }
   0x2   :  { %s699_s11 = smov 0   ;;  %s701_s12 = smov 0  }
   0x3 LB: > { %s716_s13 = sadd.s32 4294967295, %s673_s12   ;;  %s489_s14 = sadd.s32 4294967294, %s673_s12   ;;  %s673_s12 = sphi %s701_s12, %s953_s12   ;;  %s669_s11 = sphi %s699_s11, %s952_s11   ;;  %s665_s10 = sphi %s697_s10, %s951_s10   ;;  %s661_s9 = sphi %s695_s9, %s950_s9  }
   0x4   : > { %s720_s15 = sadd.s32 1, %s673_s12   ;;  %s69_s16 = sadd.s32 1, %s669_s11 }
   0x5   : > { %s66_s17 = ssub.s32 %s673_s12, %s720_s15  ;;  %p79_p0 = scmp.ne.s32.totalorder %s669_s11, %s665_s10 }
   0x6   : > { %p67_p1 = scmp.eq.s32.totalorder %s66_s17, 0  ;;  %p80_p2 = scmp.eq.s32.totalorder %s716_s13, 1 }
   0x7   : > { %p85_p3 = scmp.ne.s32.totalorder %s665_s10, %s661_s9  ;;  %p86_p4 = scmp.eq.s32.totalorder %s489_s14, 1 }
   0x8   : > { %s731_s18 = scalar_select %p67_p1, %s669_s11, %s69_s16  }
   0x9   : > { %p733_p5 = por %p80_p2, %p79_p0  ;;  %p737_p6 = por %p86_p4, %p85_p3 }
   0xa   : > { %p492_p7 = scmp.ge.s32.totalorder %s673_s12, 1  ;;  %p117_p8 = scmp.lt.s32.totalorder %s673_s12, 3 }
   0xc   : > { %p118_p9 = pnand %p492_p7, %p117_p8 }
   0xd   : > { %v180_v0 = vld [vmem:[%s946_s1] sm:$0xff] (!%p118_p9)  ;;  %v181_v1 = vld [vmem:[%s946_s1 + $0x8] sm:$0xff] (!%p118_p9)  ;;  %v182_v2 = vld [vmem:[%s946_s1 + $0x10] sm:$0xff] (!%p118_p9)  ;;  %v675_v3 = vmov (!%p118_p9), 0.0|0.0   ;;  %s494_s29 = sshll.u32 (!%p118_p9), %s716_s13, 4  ;;  %vm199_vm0 = vcmask (!%p118_p9), 187392  }
   0xe   : > { %121 = sbr.rel (%p118_p9) target bundleno = 308 (0x134), region = 28  ;;  %521 = vmatprep.subr.bf16.mxu0 (!%p118_p9), %v675_v3  ;;  %548 = vmatprep.subr.bf16.mxu1 (!%p118_p9), %v675_v3  ;;  %v522_v4 = vpack.c.bf16 (!%p118_p9), %v181_v1, %v180_v0  ;;  %v183_v5 = vld [vmem:[%s946_s1 + $0x18] sm:$0xff] (!%p118_p9)  ;;  %p141_p10 = scmp.lt.s32.totalorder (!%p118_p9), %s494_s29, 31  ;;  %v184_v7 = vld [vmem:[%s946_s1 + $0x20] sm:$0xff] (!%p118_p9)  ;;  %v185_v8 = vld [vmem:[%s946_s1 + $0x28] sm:$0xff] (!%p118_p9)  ;;  %v676_v30 = vmov (!%p118_p9), 0.0  }
   0xf   : > { %v525_v6 = vpack.c.bf16 (!%p118_p9), %v183_v5, %v182_v2  ;;  %v528_v9 = vpack.c.bf16 (!%p118_p9), %v185_v8, %v184_v7  ;;  %v186_v10 = vld [vmem:[%s946_s1 + $0x30] sm:$0xff] (!%p118_p9)  ;;  %v187_v11 = vld [vmem:[%s946_s1 + $0x38] sm:$0xff] (!%p118_p9)  ;;  %v188_v15 = vld [vmem:[%s946_s1 + $0x40] sm:$0xff] (!%p118_p9)  ;;  %vm248_vm1 = vcmask (!%p118_p9), 1046528   ;;  %s137_s27 = sand.u32 (!%p118_p9), 1, %s665_s10   ;;  %s677_s7 = smov (!%p118_p9), [#allocation2]  }
  0x10   : > { %523 = vmatpush1.bf16.msra.mxu0 (!%p118_p9), %v522_v4  ;;  %558 = vmatpush1.bf16.msra.mxu1 (!%p118_p9), %v522_v4  ;;  %v531_v14 = vpack.c.bf16 (!%p118_p9), %v187_v11, %v186_v10  ;;  %v189_v16 = vld [vmem:[%s946_s1 + $0x48] sm:$0xff] (!%p118_p9)  ;;  %v190_v18 = vld [vmem:[%s946_s1 + $0x50] sm:$0xff] (!%p118_p9)  ;;  %v191_v19 = vld [vmem:[%s946_s1 + $0x58] sm:$0xff] (!%p118_p9)  ;;  %s493_s28 = sshll.u32 (!%p118_p9), %s137_s27, 7  ;;  %s615_s8 = sshll.u32 (!%p118_p9), %s677_s7, 4  ;;  %s616_s8 = int_to_ptr.vmem [resolvable:$false] %s615_s8 }
  0x11   : > { %524 = vmatprep.subr.bf16.mxu0 (!%p118_p9), %v675_v3  ;;  %549 = vmatprep.subr.bf16.mxu1 (!%p118_p9), %v675_v3  ;;  %v534_v17 = vpack.c.bf16 (!%p118_p9), %v189_v16, %v188_v15  ;;  %v537_v20 = vpack.c.bf16 (!%p118_p9), %v191_v19, %v190_v18  ;;  %v192_v21 = vld [vmem:[%s946_s1 + $0x60] sm:$0xff] (!%p118_p9)  ;;  %v193_v22 = vld [vmem:[%s946_s1 + $0x68] sm:$0xff] (!%p118_p9)  ;;  %v194_v24 = vld [vmem:[%s946_s1 + $0x70] sm:$0xff] (!%p118_p9)  ;;  %s617_s14 = scalar_lea.vmem (!%p118_p9), %s616_s8, 4096 }
  0x12   : > { %v540_v23 = vpack.c.bf16 (!%p118_p9), %v193_v22, %v192_v21  ;;  %v195_v25 = vld [vmem:[%s946_s1 + $0x78] sm:$0xff] (!%p118_p9)  ;;  %v196_v27 = vld [vmem:[%s946_s1 + $0x80] sm:$0xff] (!%p118_p9)  ;;  %v197_v28 = vld [vmem:[%s946_s1 + $0x88] sm:$0xff] (!%p118_p9) }
  0x13   : > { %v543_v26 = vpack.c.bf16 (!%p118_p9), %v195_v25, %v194_v24  ;;  %v546_v29 = vpack.c.bf16 (!%p118_p9), %v197_v28, %v196_v27  ;;  %v198_v31 = vld [vmem:[%s946_s1 + $0x90] sm:$0x7f] (!%p118_p9) }
  0x14   : > { %526 = vmatpush1.bf16.msra.mxu0 (!%p118_p9), %v525_v6  ;;  %559 = vmatpush1.bf16.msra.mxu1 (!%p118_p9), %v525_v6 }
  0x15   : > { %s955_s29 = smov (!%p141_p10, %s494_s29), 31  ;;  %527 = vmatprep.subr.bf16.mxu0 %v675_v3  ;;  %550 = vmatprep.subr.bf16.mxu1 %v675_v3 }
  0x16   : > { %s519_s6 = sshll.u32 %s955_s29, 4  ;;  %s875_s29 = scalar_lea.vmem [#allocation2], %s493_s28 }
  0x17   : > { %s772_s17 = scalar_lea.vmem %s945_s0, %s519_s6  ;;  %s427_s30 = sshll.u32 %s875_s29, 4  ;;  %s898_s30 = int_to_ptr.vmem [resolvable:$true] %s427_s30 }
  0x18   : > { %v149_v12 = vld [vmem:[%s772_s17 + $0x8] sm:$0xff]  ;;  %529 = vmatpush1.bf16.msra.mxu0 %v528_v9  ;;  %560 = vmatpush1.bf16.msra.mxu1 %v528_v9  ;;  %v148_v32 = vld [vmem:[%s772_s17] sm:$0xff]  ;;  %v151_v34 = vld [vmem:[%s772_s17 + $0x18] sm:$0xff]  ;;  %s611_s6 = scalar_lea.vmem %s898_s30, 2048  ;;  %p618_p0 = scmp.lt.s32.totalorder %s898_s30, %s616_s8 }
  0x19   : > { %v165_v13 = vld [vmem:[%s772_s17 + $0x88] sm:$0xff]  ;;  %498 = vmatprep.mubr.msk.f32.mxu0 %vm199_vm0, %v149_v12  ;;  %530 = vmatprep.subr.bf16.mxu0 %v675_v3  ;;  %v164_v33 = vld [vmem:[%s772_s17 + $0x80] sm:$0xff]  ;;  %v167_v35 = vld [vmem:[%s772_s17 + $0x98] sm:$0xff]  ;;  %p612_p11 = scmp.ne.s32.totalorder %s898_s30, %s611_s6  ;;  %p619_p1 = scmp.lt.s32.totalorder %s617_s14, %s611_s6 }
  0x1a   : > { %506 = vmatprep.mubr.msk.f32.mxu1 %vm199_vm0, %v165_v13  ;;  %551 = vmatprep.subr.bf16.mxu1 %v675_v3  ;;  %v150_v36 = vld [vmem:[%s772_s17 + $0x10] sm:$0xff]  ;;  %v153_v38 = vld [vmem:[%s772_s17 + $0x28] sm:$0xff]  ;;  %v152_v40 = vld [vmem:[%s772_s17 + $0x20] sm:$0xff] }
  0x1b   : > { %v166_v37 = vld [vmem:[%s772_s17 + $0x90] sm:$0xff]  ;;  %v169_v39 = vld [vmem:[%s772_s17 + $0xa8] sm:$0xff]  ;;  %v168_v41 = vld [vmem:[%s772_s17 + $0xa0] sm:$0xff]  ;;  %p613_p12 = pnand %p612_p11, %p733_p5  ;;  %p620_p2 = por %p619_p1, %p618_p0 }
  0x1c   : > { %532 = vmatpush1.bf16.msra.mxu0 %v531_v14  ;;  %561 = vmatpush1.bf16.msra.mxu1 %v531_v14  ;;  %v155_v42 = vld [vmem:[%s772_s17 + $0x38] sm:$0xff]  ;;  %v154_v44 = vld [vmem:[%s772_s17 + $0x30] sm:$0xff]  ;;  %v157_v46 = vld [vmem:[%s772_s17 + $0x48] sm:$0xff] }
  0x1d   : > { %533 = vmatprep.subr.bf16.mxu0 %v675_v3  ;;  %552 = vmatprep.subr.bf16.mxu1 %v675_v3  ;;  %v171_v43 = vld [vmem:[%s772_s17 + $0xb8] sm:$0xff]  ;;  %v170_v45 = vld [vmem:[%s772_s17 + $0xb0] sm:$0xff]  ;;  %v173_v47 = vld [vmem:[%s772_s17 + $0xc8] sm:$0xff]  ;;  %p614_p13 = pneg %p613_p12 }
  0x1e   : > { %v156_v48 = vld [vmem:[%s772_s17 + $0x40] sm:$0xff]  ;;  %v159_v50 = vld [vmem:[%s772_s17 + $0x58] sm:$0xff]  ;;  %v158_v52 = vld [vmem:[%s772_s17 + $0x50] sm:$0xff] }
  0x1f   : > { %v172_v49 = vld [vmem:[%s772_s17 + $0xc0] sm:$0xff]  ;;  %v175_v51 = vld [vmem:[%s772_s17 + $0xd8] sm:$0xff]  ;;  %v174_v53 = vld [vmem:[%s772_s17 + $0xd0] sm:$0xff]  ;;  %p621_p3 = pnand %p620_p2, %p614_p13 }
  0x20   : > { %535 = vmatpush1.bf16.msra.mxu0 %v534_v17  ;;  %562 = vmatpush1.bf16.msra.mxu1 %v534_v17  ;;  %v161_v54 = vld [vmem:[%s772_s17 + $0x68] sm:$0xff]  ;;  %v160_v56 = vld [vmem:[%s772_s17 + $0x60] sm:$0xff]  ;;  %v163_v58 = vld [vmem:[%s772_s17 + $0x78] sm:$0xff] }
  0x21   : > { %536 = vmatprep.subr.bf16.mxu0 %v675_v3  ;;  %553 = vmatprep.subr.bf16.mxu1 %v675_v3  ;;  %v177_v55 = vld [vmem:[%s772_s17 + $0xe8] sm:$0xff]  ;;  %v176_v57 = vld [vmem:[%s772_s17 + $0xe0] sm:$0xff]  ;;  %v179_v59 = vld [vmem:[%s772_s17 + $0xf8] sm:$0xff] }
  0x22   : > { %v162_v60 = vld [vmem:[%s772_s17 + $0x70] sm:$0xff] }
  0x23   : > { %v178_v61 = vld [vmem:[%s772_s17 + $0xf0] sm:$0xff]  ;;  %s520_s17 = sshll.u32 %s716_s13, 11  ;;  %s904_s13 = scalar_lea.sflag [#allocation3], %s137_s27 }
  0x24   : > { %538 = vmatpush1.bf16.msra.mxu0 %v537_v20  ;;  %563 = vmatpush1.bf16.msra.mxu1 %v537_v20  ;;  %s896_s5 = scalar_lea.hbm %s947_s2, %s520_s17 }
  0x25   : > { %539 = vmatprep.subr.bf16.mxu0 %v675_v3  ;;  %554 = vmatprep.subr.bf16.mxu1 %v675_v3 }
  0x28   : > { %541 = vmatpush1.bf16.msra.mxu0 %v540_v23  ;;  %564 = vmatpush1.bf16.msra.mxu1 %v540_v23 }
  0x29   : > { %542 = vmatprep.subr.bf16.mxu0 %v675_v3  ;;  %555 = vmatprep.subr.bf16.mxu1 %v675_v3 }
  0x2c   : > { %544 = vmatpush1.bf16.msra.mxu0 %v543_v26  ;;  %565 = vmatpush1.bf16.msra.mxu1 %v543_v26 }
  0x2d   : > { %545 = vmatprep.subr.bf16.mxu0 %v675_v3  ;;  %556 = vmatprep.subr.bf16.mxu1 %v675_v3 }
  0x30   : > { %547 = vmatpush1.bf16.msra.mxu0 %v546_v29  ;;  %566 = vmatpush1.bf16.msra.mxu1 %v546_v29 }
  0x31   : > { %288 = vmatprep.subr.mxu0 %v676_v30  ;;  %557 = vmatprep.subr.mxu1 %v676_v30 }
  0x34   : > { %497 = vmatpush1.msk.msra.mxu0 %vm248_vm1, %v198_v31  ;;  %567 = vmatpush1.msk.msra.mxu1 %vm248_vm1, %v198_v31 }
  0x35   : > { %317 = vmatmul.mubr.f32.vlgmr.msra.gmra.mrb[0].mxu0 %v148_v32  ;;  %357 = vmatmul.mubr.f32.vlgmr.msra.gmra.mrb[0].mxu1 %v164_v33 }
  0x36   : > { %499 = vmatprep.mubr.msk.f32.mxu0 %vm199_vm0, %v151_v34  ;;  %507 = vmatprep.mubr.msk.f32.mxu1 %vm199_vm0, %v167_v35 }
  0x39   : > { %322 = vmatmul.mubr.f32.gmra.mrb[2].mxu0 %v150_v36  ;;  %362 = vmatmul.mubr.f32.gmra.mrb[2].mxu1 %v166_v37 }
  0x3a   : > { %500 = vmatprep.mubr.msk.f32.mxu0 %vm199_vm0, %v153_v38  ;;  %508 = vmatprep.mubr.msk.f32.mxu1 %vm199_vm0, %v169_v39 }
  0x3d   : > { %327 = vmatmul.mubr.f32.gmra.mrb[4].mxu0 %v152_v40  ;;  %367 = vmatmul.mubr.f32.gmra.mrb[4].mxu1 %v168_v41 }
  0x3e   : > { %501 = vmatprep.mubr.msk.f32.mxu0 %vm199_vm0, %v155_v42  ;;  %509 = vmatprep.mubr.msk.f32.mxu1 %vm199_vm0, %v171_v43 }
  0x41   : > { %332 = vmatmul.mubr.f32.gmra.mrb[6].mxu0 %v154_v44  ;;  %372 = vmatmul.mubr.f32.gmra.mrb[6].mxu1 %v170_v45 }
  0x42   : > { %502 = vmatprep.mubr.msk.f32.mxu0 %vm199_vm0, %v157_v46  ;;  %510 = vmatprep.mubr.msk.f32.mxu1 %vm199_vm0, %v173_v47 }
  0x45   : > { %337 = vmatmul.mubr.f32.gmra.mrb[8].mxu0 %v156_v48  ;;  %377 = vmatmul.mubr.f32.gmra.mrb[8].mxu1 %v172_v49 }
  0x46   : > { %503 = vmatprep.mubr.msk.f32.mxu0 %vm199_vm0, %v159_v50  ;;  %511 = vmatprep.mubr.msk.f32.mxu1 %vm199_vm0, %v175_v51 }
  0x49   : > { %342 = vmatmul.mubr.f32.gmra.mrb[10].mxu0 %v158_v52  ;;  %382 = vmatmul.mubr.f32.gmra.mrb[10].mxu1 %v174_v53 }
  0x4a   : > { %504 = vmatprep.mubr.msk.f32.mxu0 %vm199_vm0, %v161_v54  ;;  %512 = vmatprep.mubr.msk.f32.mxu1 %vm199_vm0, %v177_v55 }
  0x4d   : > { %347 = vmatmul.mubr.f32.gmra.mrb[12].mxu0 %v160_v56  ;;  %387 = vmatmul.mubr.f32.gmra.mrb[12].mxu1 %v176_v57 }
  0x4e   : > { %505 = vmatprep.mubr.msk.f32.mxu0 %vm199_vm0, %v163_v58  ;;  %513 = vmatprep.mubr.msk.f32.mxu1 %vm199_vm0, %v179_v59 }
  0x51   : > { %352 = vmatmul.mubr.f32.gmra.mrb[14].mxu0 %v162_v60  ;;  %392 = vmatmul.mubr.f32.gmra.mrb[14].mxu1 %v178_v61 }
 0x108   : > { %v318_v62 = vpop.f32.mrb[0].mxu0  ;;  %v358_v63 = vpop.f32.mrb[0].mxu1 }
 0x109   : > { %397 = vst [vmem:[%s875_s29] sm:$0xff] %v318_v62  ;;  %405 = vst [vmem:[%s875_s29 + $0x40] sm:$0xff] %v358_v63  ;;  %v320_v0 = vpop.f32.mrb[1].mxu0  ;;  %v360_v1 = vpop.f32.mrb[1].mxu1 }
 0x10c   : > { %v323_v2 = vpop.f32.mrb[2].mxu0  ;;  %v363_v3 = vpop.f32.mrb[2].mxu1 }
 0x10d   : > { %398 = vst [vmem:[%s875_s29 + $0x8] sm:$0xff] %v323_v2  ;;  %406 = vst [vmem:[%s875_s29 + $0x48] sm:$0xff] %v363_v3  ;;  %v325_v4 = vpop.f32.mrb[3].mxu0  ;;  %v365_v5 = vpop.f32.mrb[3].mxu1 }
 0x110   : > { %v328_v6 = vpop.f32.mrb[4].mxu0  ;;  %v368_v7 = vpop.f32.mrb[4].mxu1 }
 0x111   : > { %399 = vst [vmem:[%s875_s29 + $0x10] sm:$0xff] %v328_v6  ;;  %407 = vst [vmem:[%s875_s29 + $0x50] sm:$0xff] %v368_v7  ;;  %v330_v8 = vpop.f32.mrb[5].mxu0  ;;  %v370_v9 = vpop.f32.mrb[5].mxu1 }
 0x114   : > { %v333_v10 = vpop.f32.mrb[6].mxu0  ;;  %v373_v11 = vpop.f32.mrb[6].mxu1 }
 0x115   : > { %400 = vst [vmem:[%s875_s29 + $0x18] sm:$0xff] %v333_v10  ;;  %408 = vst [vmem:[%s875_s29 + $0x58] sm:$0xff] %v373_v11  ;;  %v335_v12 = vpop.f32.mrb[7].mxu0  ;;  %v375_v13 = vpop.f32.mrb[7].mxu1 }
 0x118   : > { %v338_v14 = vpop.f32.mrb[8].mxu0  ;;  %v378_v15 = vpop.f32.mrb[8].mxu1 }
 0x119   : > { %401 = vst [vmem:[%s875_s29 + $0x20] sm:$0xff] %v338_v14  ;;  %409 = vst [vmem:[%s875_s29 + $0x60] sm:$0xff] %v378_v15  ;;  %v340_v16 = vpop.f32.mrb[9].mxu0  ;;  %v380_v17 = vpop.f32.mrb[9].mxu1 }
 0x11c   : > { %v343_v18 = vpop.f32.mrb[10].mxu0  ;;  %v383_v19 = vpop.f32.mrb[10].mxu1 }
 0x11d   : > { %402 = vst [vmem:[%s875_s29 + $0x28] sm:$0xff] %v343_v18  ;;  %410 = vst [vmem:[%s875_s29 + $0x68] sm:$0xff] %v383_v19  ;;  %v345_v20 = vpop.f32.mrb[11].mxu0  ;;  %v385_v21 = vpop.f32.mrb[11].mxu1 }
 0x120   : > { %v348_v22 = vpop.f32.mrb[12].mxu0  ;;  %v388_v23 = vpop.f32.mrb[12].mxu1 }
 0x121   : > { %403 = vst [vmem:[%s875_s29 + $0x30] sm:$0xff] %v348_v22  ;;  %411 = vst [vmem:[%s875_s29 + $0x70] sm:$0xff] %v388_v23  ;;  %v350_v24 = vpop.f32.mrb[13].mxu0  ;;  %v390_v25 = vpop.f32.mrb[13].mxu1 }
 0x124   : > { %v353_v26 = vpop.f32.mrb[14].mxu0  ;;  %v393_v27 = vpop.f32.mrb[14].mxu1 }
 0x125   : > { %404 = vst [vmem:[%s875_s29 + $0x38] sm:$0xff] %v353_v26  ;;  %412 = vst [vmem:[%s875_s29 + $0x78] sm:$0xff] %v393_v27  ;;  %v355_v28 = vpop.f32.mrb[15].mxu0  ;;  %v395_v29 = vpop.f32.mrb[15].mxu1 }
 0x126   : > { %624 = shalt.err (!%p621_p3)
}
 0x127   : > { %s625_s16 = scalar_lea.hbm %s896_s5, 2048  ;;  %s629_s23 = scalar_lea.hbm %s947_s2, 4096 }
 0x128   : > { %p626_p4 = scmp.ne.s32.totalorder %s896_s5, %s625_s16  ;;  %p630_p9 = scmp.lt.u32.totalorder %s896_s5, %s947_s2 }
 0x129   : > { %p631_p10 = scmp.lt.u32.totalorder %s629_s23, %s625_s16  ;;  %p633_p12 = scmp.lt.u32.totalorder %s625_s16, %s896_s5 }
 0x12a   : > { %p627_p7 = pnand %p626_p4, %p733_p5 }
 0x12b   : > { %p632_p11 = por %p631_p10, %p630_p9 }
 0x12c   : > { %p628_p8 = pneg %p627_p7 }
 0x12d   : > { %p634_p13 = por %p633_p12, %p632_p11 }
 0x12f   : > { %p635_p0 = pnand %p634_p13, %p628_p8 }
 0x131   : > { %638 = shalt.err (!%p635_p0)
}
 0x132   : > { %s678_s26 = smov 128   ;;  %s679_s27 = smov 8  }
 0x133   : > { %568 = dma.vmem_to_hbm [thread:$0]  (%p733_p5), %s898_s30, 2048, %s896_s5, %s904_s13, %s678_s26, %s678_s26, %s679_s27  }
 0x134 PF: > { %p574_p1 = scmp.ge.s32.totalorder %s673_s12, 2  ;;  %s442_s28 = sand.u32 1, %s661_s9  }
 0x135   : > { %s443_s29 = scalar_lea.sflag [#allocation3], %s442_s28 }
 0x136   : > { %p571_p2 = pnand %p574_p1, %p737_p6 }
 0x138   : > { %656 = dma.done.wait (!%p571_p2), %s443_s29, 2048  }
 0x139   : > { %658 = vsyncadd (!%p571_p2), %s443_s29, 4294965248  ;;  %p12_p3 = scmp.ge.s32.totalorder %s720_s15, 4   ;;  %s950_s9 = smov %s665_s10 }
 0x13a   : > { %s951_s10 = smov %s669_s11  ;;  %s952_s11 = smov %s731_s18 }
 0x13b   : > { %s953_s12 = smov %s720_s15  ;;  %14 = sbr.rel (!%p12_p3) target bundleno = 3 (0x3), region = 63 }
 0x142   :  { %448 = vsyncpa [#allocation3], 1 }
 0x143   :  { %450 = vsyncpa [#allocation3 + $0x1], 1 }

</bundles_post_ra>
